<compile_context>
chip_gen: v5e
topology: v5e:2x2
jax: 0.10.0
libtpu: 0.0.40
codegen_flags: <defaults>
</compile_context>

<pallas_src>
import jax
import jax.numpy as jnp
from jax import lax
from jax.experimental import pallas as pl
from jax.experimental import pallas as _pl_unused  # noqa: F401
from jax.experimental.pallas import tpu as pltpu  # noqa: F401  (no grid -> no compiler params needed)

# CartPole-v0 style env dims (env.observation_space.shape[0], env.action_space.n)
N_STATES = 4
N_ACTIONS = 2
HIDDEN = 50

# ---- parameter slab layout: single (128, 128) f32 tile, one DMA -------------
ROW_W1 = 0                          # rows [0, N_STATES): W1^T rows (HIDDEN wide)
ROW_B1 = N_STATES                   # row 4: b1 (HIDDEN wide)
ROW_W2 = N_STATES + 1               # rows [5, 5+N_ACTIONS): W2 in (out, in) layout
ROW_B2 = N_STATES + 1 + N_ACTIONS   # row 7: b2, lane-dense (first N_ACTIONS lanes, rest 0)
PARAM_ROWS = 128                    # full MXU contraction dim (rows >= 8 are zero)
PARAM_LANES = 128                   # lane-aligned


def _output_layer_lane_dense(h, p_ref, b_pad):
    """N_ACTIONS XLU lane reductions assembled into one lane-dense (B_pad, 128) tile.

    h has zeros in lanes >= HIDDEN and the W2 slab rows have zeros there too,
    so reducing over the full 128 lanes is exact."""
    lane = lax.broadcasted_iota(jnp.int32, (b_pad, PARAM_LANES), 1)
    out = jnp.broadcast_to(p_ref[ROW_B2:ROW_B2 + 1, :], (b_pad, PARAM_LANES))  # +b2 (vector add)
    for j in range(N_ACTIONS):
        w2_j = p_ref[ROW_W2 + j:ROW_W2 + j + 1, :]                 # (1, 128)
        q_j = jnp.sum(h * w2_j, axis=-1, keepdims=True)            # (B_pad, 1) XLU reduce
        out = out + jnp.where(lane == j, q_j, 0.0)                 # place into lane j
    return out


def net_kernel_small(x_ref, p_ref, out_ref):
    """Act-step batches (B_pad < 128): fc1 on VPU, output on XLU, no MXU."""
    x = x_ref[...]                                                 # (B_pad, N_STATES)
    b_pad = x.shape[0]

    # Hoist the x-column lane broadcasts (XLU) out of the MAC chain so they
    # overlap with the VALU multiply-adds instead of serializing per k.
    xb = [jnp.broadcast_to(x[:, k:k + 1], (b_pad, PARAM_LANES)) for k in range(N_STATES)]

    # fc1: x @ W1 + b1 as N_STATES broadcast MACs over the full 128-lane row
    # (W1 rows / b1 are zero in lanes >= HIDDEN, so extra lanes stay zero).
    h = jnp.broadcast_to(p_ref[ROW_B1:ROW_B1 + 1, :], (b_pad, PARAM_LANES))
    for k in range(N_STATES):
        h = h + xb[k] * p_ref[ROW_W1 + k:ROW_W1 + k + 1, :]
    h = jnp.maximum(h, 0.0)                                        # ReLU (VPU)

    out_ref[...] = _output_layer_lane_dense(h, p_ref, b_pad).astype(out_ref.dtype)


def net_kernel_mxu(x_ref, p_ref, out_ref):
    """Replay batches (B_pad >= 128): fc1 as one MXU dot against the param slab."""
    x = x_ref[...]                                                 # (B_pad, 128), lanes >= N_STATES zero
    b_pad = x.shape[0]

    # x lanes >= N_STATES are zero, so slab rows 4..127 (b1/W2/b2) contribute
    # nothing to the contraction; result lanes >= HIDDEN are exactly zero.
    h = jnp.dot(x, p_ref[...], preferred_element_type=jnp.float32)  # (B_pad, 128)
    h = jnp.maximum(h + p_ref[ROW_B1:ROW_B1 + 1, :], 0.0)            # +b1, ReLU

    out_ref[...] = _output_layer_lane_dense(h, p_ref, b_pad).astype(out_ref.dtype)


def net_forward(x, param_slab):
    """Batched forward. Batch is bucketed to a multiple of 8 (f32 sublanes);
    whole batch is one block, no grid. Each new bucket retraces once."""
    B = x.shape[0]
    B_pad = max(8, ((B + 7) // 8) * 8)
    use_mxu = B_pad >= 128

    if use_mxu:
        # Pad to a full 128-lane tile so fc1 is a single MXU dot.
        x_in = jnp.pad(x, ((0, B_pad - B), (0, PARAM_LANES - N_STATES)))
        x_spec = pl.BlockSpec((B_pad, PARAM_LANES), lambda: (0, 0))
        kernel = net_kernel_mxu
        flops = 2 * B_pad * (PARAM_LANES * PARAM_LANES + HIDDEN * N_ACTIONS)
        x_bytes = B_pad * PARAM_LANES * 4
    else:
        x_in = jnp.pad(x, ((0, B_pad - B), (0, 0))) if B_pad != B else x
        x_spec = pl.BlockSpec((B_pad, N_STATES), lambda: (0, 0))
        kernel = net_kernel_small
        flops = 2 * B_pad * (N_STATES * HIDDEN + HIDDEN * N_ACTIONS)
        x_bytes = B_pad * N_STATES * 4

    bytes_accessed = x_bytes + PARAM_ROWS * PARAM_LANES * 4 + B_pad * PARAM_LANES * 4

    out = pl.pallas_call(
        kernel,
        out_shape=jax.ShapeDtypeStruct((B_pad, PARAM_LANES), jnp.float32),
        in_specs=[
            x_spec,
            pl.BlockSpec((PARAM_ROWS, PARAM_LANES), lambda: (0, 0)),
        ],
        out_specs=pl.BlockSpec((B_pad, PARAM_LANES), lambda: (0, 0)),
        cost_estimate=pl.CostEstimate(
            flops=flops, transcendentals=0, bytes_accessed=bytes_accessed),
    )(x_in, param_slab)
    return out[:B, :N_ACTIONS]


def pack_params(w1_t, b1, w2_t, b2):
    """Pack (w1_t, b1, w2_t, b2) into one lane-aligned (128, 128) f32 slab."""
    slab = jnp.zeros((PARAM_ROWS, PARAM_LANES), dtype=jnp.float32)
    slab = slab.at[ROW_W1:ROW_W1 + N_STATES, 0:HIDDEN].set(w1_t)
    slab = slab.at[ROW_B1, 0:HIDDEN].set(b1.reshape(HIDDEN))
    slab = slab.at[ROW_W2:ROW_W2 + N_ACTIONS, 0:HIDDEN].set(w2_t.T)   # (out, in) rows
    slab = slab.at[ROW_B2, 0:N_ACTIONS].set(b2.reshape(N_ACTIONS))    # lane-dense b2 row
    return slab


def init_params(key):
    """Deterministic parameter init mirroring the PyTorch module:
       weights ~ Normal(0, 0.1); biases use default Linear init (+/- 1/sqrt(fan_in))."""
    k1, k2, k3, k4 = jax.random.split(key, 4)
    # Stored pre-transposed: (in_features, out_features)
    w1_t = 0.1 * jax.random.normal(k1, (N_STATES, HIDDEN), dtype=jnp.float32)
    w2_t = 0.1 * jax.random.normal(k2, (HIDDEN, N_ACTIONS), dtype=jnp.float32)
    b1_bound = 1.0 / jnp.sqrt(float(N_STATES))
    b2_bound = 1.0 / jnp.sqrt(float(HIDDEN))
    b1 = jax.random.uniform(k3, (1, HIDDEN), jnp.float32, -b1_bound, b1_bound)
    b2 = jax.random.uniform(k4, (1, N_ACTIONS), jnp.float32, -b2_bound, b2_bound)
    return w1_t, b1, w2_t, b2


if __name__ == "__main__":
    key = jax.random.PRNGKey(0)
    k_x, k_p, k_xl = jax.random.split(key, 3)

    w1_t, b1, w2_t, b2 = init_params(k_p)
    param_slab = pack_params(w1_t, b1, w2_t, b2)

    # --- act-step sized batch (VPU/XLU path) ---------------------------------
    B = 2
    x = jax.random.normal(k_x, (B, N_STATES), dtype=jnp.float32)
    q = jax.block_until_ready(net_forward(x, param_slab))
    q_ref = jnp.maximum(x @ w1_t + b1, 0.0) @ w2_t + b2
    assert q.shape == (B, N_ACTIONS)
    assert jnp.allclose(q, q_ref, atol=1e-5, rtol=1e-5)

    # --- replay-batch sized batch (MXU fc1 path) -----------------------------
    BL = 256
    xl = jax.random.normal(k_xl, (BL, N_STATES), dtype=jnp.float32)
    ql = jax.block_until_ready(net_forward(xl, param_slab))
    ql_ref = jnp.maximum(xl @ w1_t + b1, 0.0) @ w2_t + b2
    assert ql.shape == (BL, N_ACTIONS)
    assert jnp.allclose(ql, ql_ref, atol=1e-4, rtol=1e-4)

    print("KERNEL_OK")
</pallas_src>

<mosaic_0001>
module attributes {stable_mosaic.version = 11 : i64} {
  func.func @net_kernel_small(%arg0: memref<8x4xf32, #tpu.memory_space<vmem>>, %arg1: memref<128x128xf32, #tpu.memory_space<vmem>>, %arg2: memref<8x128xf32, #tpu.memory_space<vmem>>) attributes {dimension_semantics = [], scalar_prefetch = 0 : i64, scratch_operands = 0 : i64, tpu.core_type = #tpu.core_type<tc>} {
    %c0 = arith.constant 0 : index
    %c0_0 = arith.constant 0 : index
    %0 = vector.load %arg0[%c0, %c0_0] : memref<8x4xf32, #tpu.memory_space<vmem>>, vector<8x4xf32>
    %1 = vector.extract_strided_slice %0 {offsets = [0, 0], sizes = [8, 1], strides = [1, 1]} : vector<8x4xf32> to vector<8x1xf32>
    %2 = vector.shape_cast %1 : vector<8x1xf32> to vector<8x1xf32>
    %3 = vector.broadcast %2 : vector<8x1xf32> to vector<8x128xf32>
    %4 = vector.extract_strided_slice %0 {offsets = [0, 1], sizes = [8, 1], strides = [1, 1]} : vector<8x4xf32> to vector<8x1xf32>
    %5 = vector.shape_cast %4 : vector<8x1xf32> to vector<8x1xf32>
    %6 = vector.broadcast %5 : vector<8x1xf32> to vector<8x128xf32>
    %7 = vector.extract_strided_slice %0 {offsets = [0, 2], sizes = [8, 1], strides = [1, 1]} : vector<8x4xf32> to vector<8x1xf32>
    %8 = vector.shape_cast %7 : vector<8x1xf32> to vector<8x1xf32>
    %9 = vector.broadcast %8 : vector<8x1xf32> to vector<8x128xf32>
    %10 = vector.extract_strided_slice %0 {offsets = [0, 3], sizes = [8, 1], strides = [1, 1]} : vector<8x4xf32> to vector<8x1xf32>
    %11 = vector.shape_cast %10 : vector<8x1xf32> to vector<8x1xf32>
    %12 = vector.broadcast %11 : vector<8x1xf32> to vector<8x128xf32>
    %c4 = arith.constant 4 : index
    %c0_1 = arith.constant 0 : index
    %13 = vector.load %arg1[%c4, %c0_1] : memref<128x128xf32, #tpu.memory_space<vmem>>, vector<1x128xf32>
    %14 = vector.shape_cast %13 : vector<1x128xf32> to vector<1x128xf32>
    %15 = vector.broadcast %14 : vector<1x128xf32> to vector<8x128xf32>
    %c0_2 = arith.constant 0 : index
    %c0_3 = arith.constant 0 : index
    %16 = vector.load %arg1[%c0_2, %c0_3] : memref<128x128xf32, #tpu.memory_space<vmem>>, vector<1x128xf32>
    %17 = vector.broadcast %16 : vector<1x128xf32> to vector<8x128xf32>
    %18 = arith.mulf %3, %17 : vector<8x128xf32>
    %19 = arith.addf %15, %18 : vector<8x128xf32>
    %c1 = arith.constant 1 : index
    %c0_4 = arith.constant 0 : index
    %20 = vector.load %arg1[%c1, %c0_4] : memref<128x128xf32, #tpu.memory_space<vmem>>, vector<1x128xf32>
    %21 = vector.broadcast %20 : vector<1x128xf32> to vector<8x128xf32>
    %22 = arith.mulf %6, %21 : vector<8x128xf32>
    %23 = arith.addf %19, %22 : vector<8x128xf32>
    %c2 = arith.constant 2 : index
    %c0_5 = arith.constant 0 : index
    %24 = vector.load %arg1[%c2, %c0_5] : memref<128x128xf32, #tpu.memory_space<vmem>>, vector<1x128xf32>
    %25 = vector.broadcast %24 : vector<1x128xf32> to vector<8x128xf32>
    %26 = arith.mulf %9, %25 : vector<8x128xf32>
    %27 = arith.addf %23, %26 : vector<8x128xf32>
    %c3 = arith.constant 3 : index
    %c0_6 = arith.constant 0 : index
    %28 = vector.load %arg1[%c3, %c0_6] : memref<128x128xf32, #tpu.memory_space<vmem>>, vector<1x128xf32>
    %29 = vector.broadcast %28 : vector<1x128xf32> to vector<8x128xf32>
    %30 = arith.mulf %12, %29 : vector<8x128xf32>
    %31 = arith.addf %27, %30 : vector<8x128xf32>
    %cst = arith.constant 0.000000e+00 : f32
    %32 = vector.broadcast %cst : f32 to vector<8x128xf32>
    %33 = arith.maximumf %31, %32 : vector<8x128xf32>
    %34 = tpu.iota {dimensions = array<i32: 1>} : vector<8x128xi32>
    %c7 = arith.constant 7 : index
    %c0_7 = arith.constant 0 : index
    %35 = vector.load %arg1[%c7, %c0_7] : memref<128x128xf32, #tpu.memory_space<vmem>>, vector<1x128xf32>
    %36 = vector.shape_cast %35 : vector<1x128xf32> to vector<1x128xf32>
    %37 = vector.broadcast %36 : vector<1x128xf32> to vector<8x128xf32>
    %c5 = arith.constant 5 : index
    %c0_8 = arith.constant 0 : index
    %38 = vector.load %arg1[%c5, %c0_8] : memref<128x128xf32, #tpu.memory_space<vmem>>, vector<1x128xf32>
    %39 = vector.broadcast %38 : vector<1x128xf32> to vector<8x128xf32>
    %40 = arith.mulf %33, %39 : vector<8x128xf32>
    %cst_9 = arith.constant dense<0.000000e+00> : vector<8xf32>
    %41 = vector.multi_reduction <add>, %40, %cst_9 [1] : vector<8x128xf32> to vector<8xf32>
    %42 = vector.shape_cast %41 : vector<8xf32> to vector<8x1xf32>
    %c0_i32 = arith.constant 0 : i32
    %43 = vector.broadcast %c0_i32 : i32 to vector<8x128xi32>
    %44 = arith.cmpi eq, %34, %43 : vector<8x128xi32>
    %cst_10 = arith.constant 0.000000e+00 : f32
    %45 = vector.shape_cast %42 : vector<8x1xf32> to vector<8x1xf32>
    %46 = vector.broadcast %45 : vector<8x1xf32> to vector<8x128xf32>
    %47 = vector.broadcast %cst_10 : f32 to vector<8x128xf32>
    %48 = arith.select %44, %46, %47 : vector<8x128xi1>, vector<8x128xf32>
    %49 = arith.addf %37, %48 : vector<8x128xf32>
    %c6 = arith.constant 6 : index
    %c0_11 = arith.constant 0 : index
    %50 = vector.load %arg1[%c6, %c0_11] : memref<128x128xf32, #tpu.memory_space<vmem>>, vector<1x128xf32>
    %51 = vector.broadcast %50 : vector<1x128xf32> to vector<8x128xf32>
    %52 = arith.mulf %33, %51 : vector<8x128xf32>
    %cst_12 = arith.constant dense<0.000000e+00> : vector<8xf32>
    %53 = vector.multi_reduction <add>, %52, %cst_12 [1] : vector<8x128xf32> to vector<8xf32>
    %54 = vector.shape_cast %53 : vector<8xf32> to vector<8x1xf32>
    %c1_i32 = arith.constant 1 : i32
    %55 = vector.broadcast %c1_i32 : i32 to vector<8x128xi32>
    %56 = arith.cmpi eq, %34, %55 : vector<8x128xi32>
    %cst_13 = arith.constant 0.000000e+00 : f32
    %57 = vector.shape_cast %54 : vector<8x1xf32> to vector<8x1xf32>
    %58 = vector.broadcast %57 : vector<8x1xf32> to vector<8x128xf32>
    %59 = vector.broadcast %cst_13 : f32 to vector<8x128xf32>
    %60 = arith.select %56, %58, %59 : vector<8x128xi1>, vector<8x128xf32>
    %61 = arith.addf %49, %60 : vector<8x128xf32>
    %c0_14 = arith.constant 0 : index
    %c0_15 = arith.constant 0 : index
    %62 = vector.load %arg2[%c0_14, %c0_15] : memref<8x128xf32, #tpu.memory_space<vmem>>, vector<8x128xf32>
    tpu.vector_store %arg2[%c0_14, %c0_15], %61 {strides = array<i32>} : memref<8x128xf32, #tpu.memory_space<vmem>>, vector<8x128xf32>,
    return
  }
}

</mosaic_0001>

<bundles_post_ra>
// kernel: tpu_custom_call.1
= control target key start
LH: loop header
LB: loop body
LE: loop exit
PB: predicated region body
PF: predicated region fallthrough
CT: control target
= control target key end

     0   :  { %7 = vsyncpa [#allocation3], 0  ;;  %s208_s0 = inlined_call_operand.vmem [shape: f32[8,4], index: 0, kind: input, shape index: {}]   ;;  %s209_s1 = inlined_call_operand.hbm [shape: f32[128,128], index: 1, kind: input, shape index: {}]   ;;  %s210_s2 = inlined_call_operand.hbm [shape: f32[8,128], index: 2, kind: output, shape index: {}]  }
   0x1   :  { %8 = vsyncpa [#allocation4], 0  ;;  %s15_s11 = sshll.u32 %s209_s1, 4  ;;  %s176_s12 = smov [#allocation2]   ;;  %s16_s11 = int_to_ptr.hbm [resolvable:$true] %s15_s11 }
   0x2   :  { %s17_s13 = sshll.u32 %s176_s12, 4  ;;  %s177_s14 = smov 128   ;;  %s18_s13 = int_to_ptr.vmem [resolvable:$true] %s17_s13 }
   0x3   :  { %s178_s15 = smov 8  }
   0x4   :  { %23 = dma.hbm_to_vmem [thread:$0]  %s16_s11, 2048, %s18_s13, [#allocation3], %s177_s14, %s177_s14, %s178_s15  }
   0x5   :  { %172 = dma.done.wait [#allocation3], 2048  }
   0x6   :  { %173 = vsyncadd [#allocation3], 4294965248  ;;  %v179_v0 = vmov 0   ;;  %v180_v1 = vmov 2   ;;  %v28_v2 = vld [vmem:[%s208_s0] sm:$0xff]  ;;  %v181_v3 = vmov 1   ;;  %v65_v27 = vlaneseq }
   0x7   :  { %111 = vset.pattern.permute.xlu0 %v179_v0  ;;  %113 = vset.pattern.permute.xlu1 %v180_v1  ;;  %v182_v4 = vmov 3   ;;  %v117_v7 = vld [vmem:[#allocation2] ss:$0 sm:$0xff]  ;;  %v116_v8 = vld [vmem:[#allocation2 + $0x4] ss:$0 sm:$0xff]  ;;  %s183_s0 = smov [#allocation5]  }
   0x8   :  { %31 = vperm.xlu0 %111, %v28_v2   ;;  %39 = vperm.xlu1 %113, %v28_v2   ;;  %v119_v10 = vld [vmem:[#allocation2 + $0x1] ss:$0 sm:$0xff]  ;;  %v118_v11 = vld [vmem:[#allocation2 + $0x2] ss:$0 sm:$0xff]  ;;  %v120_v12 = vld [vmem:[#allocation2 + $0x3] ss:$0 sm:$0xff] }
   0x9   :  { %v121_v22 = vld [vmem:[#allocation2 + $0x5] ss:$0 sm:$0xff]  ;;  %v122_v25 = vld [vmem:[#allocation2 + $0x6] ss:$0 sm:$0xff]  ;;  %v66_v28 = vand.u32 127, %v65_v27  ;;  %s91_s1 = sshll.u32 %s183_s0, 4  ;;  %s92_s1 = int_to_ptr.vmem [resolvable:$true] %s91_s1 }
   0xa   :  { %v123_v30 = vld [vmem:[#allocation2 + $0x7] ss:$0 sm:$0xff]  ;;  %s93_s20 = sshll.u32 %s210_s2, 4  ;;  %s94_s20 = int_to_ptr.hbm [resolvable:$true] %s93_s20 }
   0xb   :  { %vm74_vm0 = vcmp.eq.s32.totalorder %v66_v28, 0  ;;  %vm82_vm1 = vcmp.eq.s32.totalorder %v66_v28, 1 }
  0x10   :  { %112 = vset.pattern.permute.xlu0 %v181_v3  ;;  %114 = vset.pattern.permute.xlu1 %v182_v4 }
  0x11   :  { %35 = vperm.xlu0 %112, %v28_v2   ;;  %43 = vperm.xlu1 %114, %v28_v2  }
  0x19   :  { %115 = vset.pattern.permute.xlu0 %v182_v4 }
  0x7a   :  { %v32_v5 = vpop.permute.xlu0 %31  ;;  %v40_v6 = vpop.permute.xlu1 %39 }
  0x7b   :  { %v50_v9 = vmul.f32 %v117_v7, %v32_v5  ;;  %v58_v17 = vmul.f32 %v118_v11, %v40_v6 }
  0x7d   :  { %v51_v15 = vadd.f32 %v116_v8, %v50_v9 }
  0x83   :  { %v36_v13 = vpop.permute.xlu0 %35  ;;  %v44_v14 = vpop.permute.xlu1 %43 }
  0x84   :  { %v54_v16 = vmul.f32 %v119_v10, %v36_v13  ;;  %v62_v19 = vmul.f32 %v120_v12, %v44_v14 }
  0x86   :  { %v55_v18 = vadd.f32 %v54_v16, %v51_v15 }
  0x88   :  { %v59_v20 = vadd.f32 %v58_v17, %v55_v18 }
  0x8a   :  { %v63_v21 = vadd.f32 %v62_v19, %v59_v20 }
  0x8c   :  { %v64_v23 = vmax.f32 %v63_v21, 0.0 }
  0x8e   :  { %v71_v24 = vmul.f32 %v121_v22, %v64_v23  ;;  %v79_v26 = vmul.f32 %v122_v25, %v64_v23 }
  0x90   :  { %72 = vadd.xlane.f32.xlu2 %v71_v24 }
  0x98   :  { %80 = vadd.xlane.f32.xlu2 %v79_v26 }
 0x103   :  { %v73_v29 = vpop.xlane.xlu2 %72 }
 0x104   :  { %v75_v31 = vsel %vm74_vm0, %v73_v29, 0.0 }
 0x105   :  { %v76_v32 = vadd.f32 %v123_v30, %v75_v31 }
 0x10b   :  { %v81_v33 = vpop.xlane.xlu2 %80 }
 0x10c   :  { %v83_v34 = vsel %vm82_vm1, %v81_v33, 0.0 }
 0x10d   :  { %v84_v35 = vadd.f32 %v83_v34, %v76_v32 }
 0x10f   :  { %85 = vst [vmem:[#allocation5] sm:$0xff] %v84_v35 }
 0x110   :  { %96 = dma.vmem_to_hbm [thread:$0]  %s92_s1, 128, %s94_s20, [#allocation4]  }
 0x111   :  { %174 = dma.done.wait [#allocation4], 128  }
 0x112   :  { %175 = vsyncadd [#allocation4], 4294967168 }
 0x113   :  { %101 = vsyncpa [#allocation3], 1 }
 0x114   :  { %102 = vsyncpa [#allocation4], 1 }

</bundles_post_ra>
